<compile_context>
chip_gen: v7x
topology: tpu7x:2x2x1
jax: 0.10.0
libtpu: 0.0.40
codegen_flags: <defaults>
</compile_context>

<pallas_src>
import functools

import jax
import jax.numpy as jnp
from jax.experimental import pallas as pl
from jax.experimental.pallas import tpu as pltpu

EPS = 1e-5


def basic_block_kernel(xf_ref, w1_ref, g1_ref, b1_ref, w2_ref, g2_ref, b2_ref,
                       out_ref, *, C):
    """Fused conv3x3 -> BN -> ReLU -> conv3x3 -> BN -> +identity -> ReLU.

    Activations use the lane-folded layout (N, H[+2], W*C); the trailing lane
    axis is W*C wide (lane-dense).  Conv weights arrive pre-folded/fused as
    (3*W*C, W*C) bf16 block-band-diagonal matrices.
    """
    N, Hp, WC = xf_ref.shape
    H = Hp - 2
    M = N * H
    W = WC // C
    inv_count = 1.0 / float(N * H * W)

    def bn_train(acc, g_ref, b_ref):
        # Per-channel batch statistics over (N, H, W), single pass (f32).
        s = jnp.sum(acc, axis=0, keepdims=True)              # (1, WC) sublane reduce
        q = jnp.sum(acc * acc, axis=0, keepdims=True)        # (1, WC)
        sq = jnp.concatenate([s, q], axis=0)                 # (2, WC), one vreg row pair
        # XLU lane roll-add tree: after log2(W) steps every lane w*C + c holds
        # the sum over all w of channel c (replaces the old cavg MXU matmuls).
        shift = C
        while shift < WC:
            sq = sq + pltpu.roll(sq, shift=shift, axis=1)
            shift *= 2
        sq = sq * inv_count
        mean = sq[0:1, :]
        var = jnp.maximum(sq[1:2, :] - mean * mean, 0.0)      # clamp: cancellation safety
        return (acc - mean) * jax.lax.rsqrt(var + EPS) * g_ref[...] + b_ref[...]

    def im2col(xp):
        # (N, H+2, WC) -> (M, 3*WC): stack the three kh-shifted slabs on lanes.
        slabs = [xp[:, kh:kh + H, :].reshape(M, WC) for kh in range(3)]
        return jnp.concatenate(slabs, axis=-1), slabs[1]

    # ---- load x once; build conv1 im2col slab in registers -------------------
    x = xf_ref[...]                                           # (N, Hp, WC) f32
    xs, identity = im2col(x)                                  # identity = kh=1 slab (f32)

    # ---- conv1: single fused (M, 3*WC) x (3*WC, WC) bf16 MXU matmul ----------
    acc1 = jnp.dot(xs.astype(jnp.bfloat16), w1_ref[...],
                   preferred_element_type=jnp.float32)        # (M, WC) f32

    # ---- bn1 + relu (f32) -----------------------------------------------------
    y = jnp.maximum(bn_train(acc1, g1_ref, b1_ref), 0.0)

    # ---- conv2: H halo built in registers, same fused matmul ------------------
    zrow = jnp.zeros((N, 1, WC), jnp.float32)
    yp = jnp.concatenate([zrow, y.reshape(N, H, WC), zrow], axis=1)
    ys, _ = im2col(yp)
    acc2 = jnp.dot(ys.astype(jnp.bfloat16), w2_ref[...],
                   preferred_element_type=jnp.float32)

    # ---- bn2 + residual add + relu (f32) --------------------------------------
    z = jnp.maximum(bn_train(acc2, g2_ref, b2_ref) + identity, 0.0)
    out_ref[...] = z.reshape(N, H, WC).astype(out_ref.dtype)


def _fold_conv_weight(w, width):
    """(3, 3, Cin, Cout) -> (3*W*Cin, W*Cout) fused block-band-diagonal matrix.

    row = kh*(W*Cin) + w_in*Cin + ci, col = w_out*Cout + co, value
    w[kh, kw, ci, co] with kw = w_in - w_out + 1, zero outside |w_in-w_out|<=1.
    This folds the kw taps, the width-dim zero padding, and the kh-tap fusion
    (K = 3*W*Cin) into the matmul itself.
    """
    a = jnp.arange(width)
    k = jnp.arange(3)
    # sel[kw, w_in, w_out] = 1 iff w_in == w_out + (kw - 1)
    sel = (a[None, :, None] == (a[None, None, :] + k[:, None, None] - 1))
    sel = sel.astype(w.dtype)
    big = jnp.einsum('hkio,kab->haibo', w, sel)               # (3, W, Cin, W, Cout)
    cin, cout = w.shape[2], w.shape[3]
    return big.reshape(3 * width * cin, width * cout)


def basic_block_forward(x_nchw, w1, g1, b1, w2, g2, b2):
    """x_nchw: (N, C, H, W) f32; conv weights (3, 3, Cin, Cout); BN params (C,)."""
    N, C, H, W = x_nchw.shape
    WC = W * C
    Hp = H + 2
    assert W & (W - 1) == 0, "roll-add BN tree assumes W is a power of two"

    # NCHW -> NHWC -> pad H by 1 -> fold (W, C) onto the lane axis.
    x_nhwc = jnp.transpose(x_nchw, (0, 2, 3, 1))
    xf = jnp.pad(x_nhwc, ((0, 0), (1, 1), (0, 0), (0, 0))).reshape(N, Hp, WC)

    # Folded+fused conv weights in bf16 (matmuls accumulate in f32).
    w1f = _fold_conv_weight(w1, W).astype(jnp.bfloat16)
    w2f = _fold_conv_weight(w2, W).astype(jnp.bfloat16)

    # BN affine params broadcast to the folded lane axis (lane index = w*C + c).
    g1f = jnp.tile(g1, W).reshape(1, WC)
    b1f = jnp.tile(b1, W).reshape(1, WC)
    g2f = jnp.tile(g2, W).reshape(1, WC)
    b2f = jnp.tile(b2, W).reshape(1, WC)

    kernel = functools.partial(basic_block_kernel, C=C)

    # TODO(synk): at this demo size everything is VMEM-resident in one grid
    # step; larger shapes need a 'parallel' row-block grid + two-phase BN stats.
    out_f = pl.pallas_call(
        kernel,
        out_shape=jax.ShapeDtypeStruct((N, H, WC), jnp.float32),
        grid=(1,),
        in_specs=[
            pl.BlockSpec((N, Hp, WC), lambda i: (0, 0, 0)),
            pl.BlockSpec((3 * WC, WC), lambda i: (0, 0)),
            pl.BlockSpec((1, WC), lambda i: (0, 0)),
            pl.BlockSpec((1, WC), lambda i: (0, 0)),
            pl.BlockSpec((3 * WC, WC), lambda i: (0, 0)),
            pl.BlockSpec((1, WC), lambda i: (0, 0)),
            pl.BlockSpec((1, WC), lambda i: (0, 0)),
        ],
        out_specs=pl.BlockSpec((N, H, WC), lambda i: (0, 0, 0)),
        compiler_params=pltpu.CompilerParams(
            dimension_semantics=("arbitrary",)),
    )(xf, w1f, g1f, b1f, w2f, g2f, b2f)

    out_nhwc = out_f.reshape(N, H, W, C)
    return jnp.transpose(out_nhwc, (0, 3, 1, 2))


def _reference_forward(x_nchw, w1, g1, b1, w2, g2, b2):
    """Pure-JAX (XLA, f32) reference with identical semantics, for validation."""
    def conv3x3(x, w):
        n, h, wd, _ = x.shape
        xp = jnp.pad(x, ((0, 0), (1, 1), (1, 1), (0, 0)))
        acc = jnp.zeros((n, h, wd, w.shape[-1]), jnp.float32)
        for kh in range(3):
            for kw in range(3):
                acc = acc + jnp.einsum('nhwc,cd->nhwd',
                                       xp[:, kh:kh + h, kw:kw + wd, :], w[kh, kw])
        return acc

    def bn(x, g, b):
        mean = jnp.mean(x, axis=(0, 1, 2), keepdims=True)
        var = jnp.mean((x - mean) ** 2, axis=(0, 1, 2), keepdims=True)
        return (x - mean) * jax.lax.rsqrt(var + EPS) * g + b

    xn = jnp.transpose(x_nchw, (0, 2, 3, 1))
    y = jnp.maximum(bn(conv3x3(xn, w1), g1, b1), 0.0)
    z = jnp.maximum(bn(conv3x3(y, w2), g2, b2) + xn, 0.0)
    return jnp.transpose(z, (0, 3, 1, 2))


if __name__ == "__main__":
    # stride=1, downsample=None => in_channel == out_channel.
    # W * C = 16 * 8 = 128: the folded lane axis is exactly one lane-width.
    N, C, H, W = 2, 8, 16, 16

    key = jax.random.PRNGKey(0)
    kx, kw1, kw2, kg1, kb1, kg2, kb2 = jax.random.split(key, 7)

    x = jax.random.normal(kx, (N, C, H, W), jnp.float32)

    # Conv weights as (kh, kw, Cin, Cout) — transposed PyTorch (Cout, Cin, 3, 3).
    w1 = jax.random.normal(kw1, (3, 3, C, C), jnp.float32) * 0.1
    w2 = jax.random.normal(kw2, (3, 3, C, C), jnp.float32) * 0.1

    # BatchNorm affine params (PyTorch default gamma=1, beta=0; randomized so
    # the correctness check is nontrivial).
    g1 = 1.0 + 0.1 * jax.random.normal(kg1, (C,), jnp.float32)
    b1 = 0.1 * jax.random.normal(kb1, (C,), jnp.float32)
    g2 = 1.0 + 0.1 * jax.random.normal(kg2, (C,), jnp.float32)
    b2 = 0.1 * jax.random.normal(kb2, (C,), jnp.float32)

    out = basic_block_forward(x, w1, g1, b1, w2, g2, b2)
    out = jax.block_until_ready(out)
    assert out.shape == (N, C, H, W)

    ref = _reference_forward(x, w1, g1, b1, w2, g2, b2)
    max_err = float(jnp.max(jnp.abs(out - ref)))
    # Tolerance loosened vs the all-f32 version: conv inputs are bf16 (weights
    # + activation slabs) while accumulation / BN / residual stay f32.
    assert max_err < 5e-2, f"max |err| = {max_err}"

    print("KERNEL_OK")
</pallas_src>

<mosaic_0001>
module attributes {stable_mosaic.version = 11 : i64} {
  func.func @basic_block_kernel(%arg0: i32, %arg1: memref<2x18x128xf32, #tpu.memory_space<vmem>>, %arg2: memref<384x128xbf16, #tpu.memory_space<vmem>>, %arg3: memref<1x128xf32, #tpu.memory_space<vmem>>, %arg4: memref<1x128xf32, #tpu.memory_space<vmem>>, %arg5: memref<384x128xbf16, #tpu.memory_space<vmem>>, %arg6: memref<1x128xf32, #tpu.memory_space<vmem>>, %arg7: memref<1x128xf32, #tpu.memory_space<vmem>>, %arg8: memref<2x16x128xf32, #tpu.memory_space<vmem>>) attributes {dimension_semantics = [#tpu.dimension_semantics<arbitrary>], iteration_bounds = array<i64: 1>, scalar_prefetch = 0 : i64, scratch_operands = 0 : i64, tpu.core_type = #tpu.core_type<tc>, window_params = [{pipeline_mode = #tpu.pipeline_mode<synchronous>, transform_indices = @transform_0, window_bounds = array<i64: 2, 18, 128>}, {pipeline_mode = #tpu.pipeline_mode<synchronous>, transform_indices = @transform_1, window_bounds = array<i64: 384, 128>}, {pipeline_mode = #tpu.pipeline_mode<synchronous>, transform_indices = @transform_2, window_bounds = array<i64: 1, 128>}, {pipeline_mode = #tpu.pipeline_mode<synchronous>, transform_indices = @transform_3, window_bounds = array<i64: 1, 128>}, {pipeline_mode = #tpu.pipeline_mode<synchronous>, transform_indices = @transform_4, window_bounds = array<i64: 384, 128>}, {pipeline_mode = #tpu.pipeline_mode<synchronous>, transform_indices = @transform_5, window_bounds = array<i64: 1, 128>}, {pipeline_mode = #tpu.pipeline_mode<synchronous>, transform_indices = @transform_6, window_bounds = array<i64: 1, 128>}, {pipeline_mode = #tpu.pipeline_mode<synchronous>, transform_indices = @transform_7, window_bounds = array<i64: 2, 16, 128>}]} {
    %c0 = arith.constant 0 : index
    %c0_0 = arith.constant 0 : index
    %c0_1 = arith.constant 0 : index
    %0 = vector.load %arg1[%c0, %c0_0, %c0_1] : memref<2x18x128xf32, #tpu.memory_space<vmem>>, vector<2x18x128xf32>
    %1 = vector.extract_strided_slice %0 {offsets = [0, 0, 0], sizes = [2, 16, 128], strides = [1, 1, 1]} : vector<2x18x128xf32> to vector<2x16x128xf32>
    %2 = vector.shape_cast %1 : vector<2x16x128xf32> to vector<32x128xf32>
    %3 = vector.extract_strided_slice %0 {offsets = [0, 1, 0], sizes = [2, 16, 128], strides = [1, 1, 1]} : vector<2x18x128xf32> to vector<2x16x128xf32>
    %4 = vector.shape_cast %3 : vector<2x16x128xf32> to vector<32x128xf32>
    %5 = vector.extract_strided_slice %0 {offsets = [0, 2, 0], sizes = [2, 16, 128], strides = [1, 1, 1]} : vector<2x18x128xf32> to vector<2x16x128xf32>
    %6 = vector.shape_cast %5 : vector<2x16x128xf32> to vector<32x128xf32>
    %7 = tpu.concatenate %2, %4, %6 in 1 : vector<32x128xf32>, vector<32x128xf32>, vector<32x128xf32> -> vector<32x384xf32>
    %8 = arith.truncf %7 : vector<32x384xf32> to vector<32x384xbf16>
    %c0_2 = arith.constant 0 : index
    %c0_3 = arith.constant 0 : index
    %9 = vector.load %arg2[%c0_2, %c0_3] : memref<384x128xbf16, #tpu.memory_space<vmem>>, vector<384x128xbf16>
    %cst = arith.constant dense<0.000000e+00> : vector<32x128xf32>
    %10 = tpu.matmul %8, %9, %cst {dimension_numbers = #tpu.dot_dimension_numbers<[1], [0], [0], [1], [0, 0, 1, 1], [], []>} : vector<32x384xbf16>, vector<384x128xbf16>, vector<32x128xf32> -> vector<32x128xf32>
    %cst_4 = arith.constant dense<0.000000e+00> : vector<128xf32>
    %11 = vector.multi_reduction <add>, %10, %cst_4 [0] : vector<32x128xf32> to vector<128xf32>
    %12 = vector.shape_cast %11 : vector<128xf32> to vector<1x128xf32>
    %13 = arith.mulf %10, %10 : vector<32x128xf32>
    %cst_5 = arith.constant dense<0.000000e+00> : vector<128xf32>
    %14 = vector.multi_reduction <add>, %13, %cst_5 [0] : vector<32x128xf32> to vector<128xf32>
    %15 = vector.shape_cast %14 : vector<128xf32> to vector<1x128xf32>
    %16 = tpu.concatenate %12, %15 in 0 : vector<1x128xf32>, vector<1x128xf32> -> vector<2x128xf32>
    %c8_i32 = arith.constant 8 : i32
    %17 = tpu.dynamic_rotate %16 by %c8_i32 dim 1 : vector<2x128xf32>, i32 -> vector<2x128xf32>
    %18 = arith.addf %16, %17 : vector<2x128xf32>
    %c16_i32 = arith.constant 16 : i32
    %19 = tpu.dynamic_rotate %18 by %c16_i32 dim 1 : vector<2x128xf32>, i32 -> vector<2x128xf32>
    %20 = arith.addf %18, %19 : vector<2x128xf32>
    %c32_i32 = arith.constant 32 : i32
    %21 = tpu.dynamic_rotate %20 by %c32_i32 dim 1 : vector<2x128xf32>, i32 -> vector<2x128xf32>
    %22 = arith.addf %20, %21 : vector<2x128xf32>
    %c64_i32 = arith.constant 64 : i32
    %23 = tpu.dynamic_rotate %22 by %c64_i32 dim 1 : vector<2x128xf32>, i32 -> vector<2x128xf32>
    %24 = arith.addf %22, %23 : vector<2x128xf32>
    %cst_6 = arith.constant 0.001953125 : f32
    %25 = vector.broadcast %cst_6 : f32 to vector<2x128xf32>
    %26 = arith.mulf %24, %25 : vector<2x128xf32>
    %27 = vector.extract_strided_slice %26 {offsets = [0, 0], sizes = [1, 128], strides = [1, 1]} : vector<2x128xf32> to vector<1x128xf32>
    %28 = vector.extract_strided_slice %26 {offsets = [1, 0], sizes = [1, 128], strides = [1, 1]} : vector<2x128xf32> to vector<1x128xf32>
    %29 = arith.mulf %27, %27 : vector<1x128xf32>
    %30 = arith.subf %28, %29 : vector<1x128xf32>
    %cst_7 = arith.constant 0.000000e+00 : f32
    %31 = vector.broadcast %cst_7 : f32 to vector<1x128xf32>
    %32 = arith.maximumf %30, %31 : vector<1x128xf32>
    %33 = vector.broadcast %27 : vector<1x128xf32> to vector<32x128xf32>
    %34 = arith.subf %10, %33 : vector<32x128xf32>
    %cst_8 = arith.constant 9.99999974E-6 : f32
    %35 = vector.broadcast %cst_8 : f32 to vector<1x128xf32>
    %36 = arith.addf %32, %35 : vector<1x128xf32>
    %37 = math.rsqrt %36 : vector<1x128xf32>
    %38 = vector.broadcast %37 : vector<1x128xf32> to vector<32x128xf32>
    %39 = arith.mulf %34, %38 : vector<32x128xf32>
    %c0_9 = arith.constant 0 : index
    %c0_10 = arith.constant 0 : index
    %40 = vector.load %arg3[%c0_9, %c0_10] : memref<1x128xf32, #tpu.memory_space<vmem>>, vector<1x128xf32>
    %41 = vector.broadcast %40 : vector<1x128xf32> to vector<32x128xf32>
    %42 = arith.mulf %39, %41 : vector<32x128xf32>
    %c0_11 = arith.constant 0 : index
    %c0_12 = arith.constant 0 : index
    %43 = vector.load %arg4[%c0_11, %c0_12] : memref<1x128xf32, #tpu.memory_space<vmem>>, vector<1x128xf32>
    %44 = vector.broadcast %43 : vector<1x128xf32> to vector<32x128xf32>
    %45 = arith.addf %42, %44 : vector<32x128xf32>
    %cst_13 = arith.constant 0.000000e+00 : f32
    %46 = vector.broadcast %cst_13 : f32 to vector<32x128xf32>
    %47 = arith.maximumf %45, %46 : vector<32x128xf32>
    %cst_14 = arith.constant 0.000000e+00 : f32
    %48 = vector.broadcast %cst_14 : f32 to vector<2x1x128xf32>
    %49 = vector.shape_cast %47 : vector<32x128xf32> to vector<2x16x128xf32>
    %50 = tpu.concatenate %48, %49, %48 in 1 : vector<2x1x128xf32>, vector<2x16x128xf32>, vector<2x1x128xf32> -> vector<2x18x128xf32>
    %51 = vector.extract_strided_slice %50 {offsets = [0, 0, 0], sizes = [2, 16, 128], strides = [1, 1, 1]} : vector<2x18x128xf32> to vector<2x16x128xf32>
    %52 = vector.shape_cast %51 : vector<2x16x128xf32> to vector<32x128xf32>
    %53 = vector.extract_strided_slice %50 {offsets = [0, 1, 0], sizes = [2, 16, 128], strides = [1, 1, 1]} : vector<2x18x128xf32> to vector<2x16x128xf32>
    %54 = vector.shape_cast %53 : vector<2x16x128xf32> to vector<32x128xf32>
    %55 = vector.extract_strided_slice %50 {offsets = [0, 2, 0], sizes = [2, 16, 128], strides = [1, 1, 1]} : vector<2x18x128xf32> to vector<2x16x128xf32>
    %56 = vector.shape_cast %55 : vector<2x16x128xf32> to vector<32x128xf32>
    %57 = tpu.concatenate %52, %54, %56 in 1 : vector<32x128xf32>, vector<32x128xf32>, vector<32x128xf32> -> vector<32x384xf32>
    %58 = arith.truncf %57 : vector<32x384xf32> to vector<32x384xbf16>
    %c0_15 = arith.constant 0 : index
    %c0_16 = arith.constant 0 : index
    %59 = vector.load %arg5[%c0_15, %c0_16] : memref<384x128xbf16, #tpu.memory_space<vmem>>, vector<384x128xbf16>
    %cst_17 = arith.constant dense<0.000000e+00> : vector<32x128xf32>
    %60 = tpu.matmul %58, %59, %cst_17 {dimension_numbers = #tpu.dot_dimension_numbers<[1], [0], [0], [1], [0, 0, 1, 1], [], []>} : vector<32x384xbf16>, vector<384x128xbf16>, vector<32x128xf32> -> vector<32x128xf32>
    %cst_18 = arith.constant dense<0.000000e+00> : vector<128xf32>
    %61 = vector.multi_reduction <add>, %60, %cst_18 [0] : vector<32x128xf32> to vector<128xf32>
    %62 = vector.shape_cast %61 : vector<128xf32> to vector<1x128xf32>
    %63 = arith.mulf %60, %60 : vector<32x128xf32>
    %cst_19 = arith.constant dense<0.000000e+00> : vector<128xf32>
    %64 = vector.multi_reduction <add>, %63, %cst_19 [0] : vector<32x128xf32> to vector<128xf32>
    %65 = vector.shape_cast %64 : vector<128xf32> to vector<1x128xf32>
    %66 = tpu.concatenate %62, %65 in 0 : vector<1x128xf32>, vector<1x128xf32> -> vector<2x128xf32>
    %c8_i32_20 = arith.constant 8 : i32
    %67 = tpu.dynamic_rotate %66 by %c8_i32_20 dim 1 : vector<2x128xf32>, i32 -> vector<2x128xf32>
    %68 = arith.addf %66, %67 : vector<2x128xf32>
    %c16_i32_21 = arith.constant 16 : i32
    %69 = tpu.dynamic_rotate %68 by %c16_i32_21 dim 1 : vector<2x128xf32>, i32 -> vector<2x128xf32>
    %70 = arith.addf %68, %69 : vector<2x128xf32>
    %c32_i32_22 = arith.constant 32 : i32
    %71 = tpu.dynamic_rotate %70 by %c32_i32_22 dim 1 : vector<2x128xf32>, i32 -> vector<2x128xf32>
    %72 = arith.addf %70, %71 : vector<2x128xf32>
    %c64_i32_23 = arith.constant 64 : i32
    %73 = tpu.dynamic_rotate %72 by %c64_i32_23 dim 1 : vector<2x128xf32>, i32 -> vector<2x128xf32>
    %74 = arith.addf %72, %73 : vector<2x128xf32>
    %cst_24 = arith.constant 0.001953125 : f32
    %75 = vector.broadcast %cst_24 : f32 to vector<2x128xf32>
    %76 = arith.mulf %74, %75 : vector<2x128xf32>
    %77 = vector.extract_strided_slice %76 {offsets = [0, 0], sizes = [1, 128], strides = [1, 1]} : vector<2x128xf32> to vector<1x128xf32>
    %78 = vector.extract_strided_slice %76 {offsets = [1, 0], sizes = [1, 128], strides = [1, 1]} : vector<2x128xf32> to vector<1x128xf32>
    %79 = arith.mulf %77, %77 : vector<1x128xf32>
    %80 = arith.subf %78, %79 : vector<1x128xf32>
    %cst_25 = arith.constant 0.000000e+00 : f32
    %81 = vector.broadcast %cst_25 : f32 to vector<1x128xf32>
    %82 = arith.maximumf %80, %81 : vector<1x128xf32>
    %83 = vector.broadcast %77 : vector<1x128xf32> to vector<32x128xf32>
    %84 = arith.subf %60, %83 : vector<32x128xf32>
    %cst_26 = arith.constant 9.99999974E-6 : f32
    %85 = vector.broadcast %cst_26 : f32 to vector<1x128xf32>
    %86 = arith.addf %82, %85 : vector<1x128xf32>
    %87 = math.rsqrt %86 : vector<1x128xf32>
    %88 = vector.broadcast %87 : vector<1x128xf32> to vector<32x128xf32>
    %89 = arith.mulf %84, %88 : vector<32x128xf32>
    %c0_27 = arith.constant 0 : index
    %c0_28 = arith.constant 0 : index
    %90 = vector.load %arg6[%c0_27, %c0_28] : memref<1x128xf32, #tpu.memory_space<vmem>>, vector<1x128xf32>
    %91 = vector.broadcast %90 : vector<1x128xf32> to vector<32x128xf32>
    %92 = arith.mulf %89, %91 : vector<32x128xf32>
    %c0_29 = arith.constant 0 : index
    %c0_30 = arith.constant 0 : index
    %93 = vector.load %arg7[%c0_29, %c0_30] : memref<1x128xf32, #tpu.memory_space<vmem>>, vector<1x128xf32>
    %94 = vector.broadcast %93 : vector<1x128xf32> to vector<32x128xf32>
    %95 = arith.addf %92, %94 : vector<32x128xf32>
    %96 = arith.addf %95, %4 : vector<32x128xf32>
    %cst_31 = arith.constant 0.000000e+00 : f32
    %97 = vector.broadcast %cst_31 : f32 to vector<32x128xf32>
    %98 = arith.maximumf %96, %97 : vector<32x128xf32>
    %99 = vector.shape_cast %98 : vector<32x128xf32> to vector<2x16x128xf32>
    %c0_32 = arith.constant 0 : index
    %c0_33 = arith.constant 0 : index
    %c0_34 = arith.constant 0 : index
    %100 = vector.load %arg8[%c0_32, %c0_33, %c0_34] : memref<2x16x128xf32, #tpu.memory_space<vmem>>, vector<2x16x128xf32>
    tpu.vector_store %arg8[%c0_32, %c0_33, %c0_34], %99 {strides = array<i32>} : memref<2x16x128xf32, #tpu.memory_space<vmem>>, vector<2x16x128xf32>,
    return
  }
  func.func @transform_0(%arg0: i32) -> (i32, i32, i32) {
    %c0_i32 = arith.constant 0 : i32
    %c0_i32_0 = arith.constant 0 : i32
    %c0_i32_1 = arith.constant 0 : i32
    %c0_i32_2 = arith.constant 0 : i32
    return %c0_i32, %c0_i32_0, %c0_i32_1 : i32, i32, i32
  }
  func.func @transform_1(%arg0: i32) -> (i32, i32) {
    %c0_i32 = arith.constant 0 : i32
    %c0_i32_0 = arith.constant 0 : i32
    %c0_i32_1 = arith.constant 0 : i32
    return %c0_i32, %c0_i32_0 : i32, i32
  }
  func.func @transform_2(%arg0: i32) -> (i32, i32) {
    %c0_i32 = arith.constant 0 : i32
    %c0_i32_0 = arith.constant 0 : i32
    %c0_i32_1 = arith.constant 0 : i32
    return %c0_i32, %c0_i32_0 : i32, i32
  }
  func.func @transform_3(%arg0: i32) -> (i32, i32) {
    %c0_i32 = arith.constant 0 : i32
    %c0_i32_0 = arith.constant 0 : i32
    %c0_i32_1 = arith.constant 0 : i32
    return %c0_i32, %c0_i32_0 : i32, i32
  }
  func.func @transform_4(%arg0: i32) -> (i32, i32) {
    %c0_i32 = arith.constant 0 : i32
    %c0_i32_0 = arith.constant 0 : i32
    %c0_i32_1 = arith.constant 0 : i32
    return %c0_i32, %c0_i32_0 : i32, i32
  }
  func.func @transform_5(%arg0: i32) -> (i32, i32) {
    %c0_i32 = arith.constant 0 : i32
    %c0_i32_0 = arith.constant 0 : i32
    %c0_i32_1 = arith.constant 0 : i32
    return %c0_i32, %c0_i32_0 : i32, i32
  }
  func.func @transform_6(%arg0: i32) -> (i32, i32) {
    %c0_i32 = arith.constant 0 : i32
    %c0_i32_0 = arith.constant 0 : i32
    %c0_i32_1 = arith.constant 0 : i32
    return %c0_i32, %c0_i32_0 : i32, i32
  }
  func.func @transform_7(%arg0: i32) -> (i32, i32, i32) {
    %c0_i32 = arith.constant 0 : i32
    %c0_i32_0 = arith.constant 0 : i32
    %c0_i32_1 = arith.constant 0 : i32
    %c0_i32_2 = arith.constant 0 : i32
    return %c0_i32, %c0_i32_0, %c0_i32_1 : i32, i32, i32
  }
}

</mosaic_0001>

<bundles_post_ra>
// kernel: tpu_custom_call.1
= control target key start
LH: loop header
LB: loop body
LE: loop exit
PB: predicated region body
PF: predicated region fallthrough
CT: control target
= control target key end

     0   :  { %12 = vsyncpa [#allocation3], 0  ;;  %s1471_s0 = inlined_call_operand.vmem [shape: f32[2,18,128], index: 0, kind: input, shape index: {}]   ;;  %s1472_s1 = inlined_call_operand.hbm [shape: bf16[384,128], index: 1, kind: input, shape index: {}]   ;;  %s1473_s2 = inlined_call_operand.vmem [shape: f32[1,128], index: 2, kind: input, shape index: {}]   ;;  %s1474_s3 = inlined_call_operand.vmem [shape: f32[1,128], index: 3, kind: input, shape index: {}]   ;;  %s1475_s4 = inlined_call_operand.hbm [shape: bf16[384,128], index: 4, kind: input, shape index: {}]   ;;  %s1476_s5 = inlined_call_operand.vmem [shape: f32[1,128], index: 5, kind: input, shape index: {}]   ;;  %s1477_s6 = inlined_call_operand.vmem [shape: f32[1,128], index: 6, kind: input, shape index: {}]   ;;  %s1478_s7 = inlined_call_operand.hbm [shape: f32[2,16,128], index: 7, kind: output, shape index: {}]  }
   0x1   :  { %13 = vsyncpa [#allocation6], 0 }
   0x2   :  { %14 = vsyncpa [#allocation4], 0  ;;  %s1251_s24 = smov [#allocation2]   ;;  %s1179_s28 = scalar_lea.hbm %s1472_s1, 3072 }
   0x3   :  { %s22_s25 = sshll.u32 %s1251_s24, 4  ;;  %p1180_p0 = scmp.ne.s32.totalorder %s1472_s1, %s1179_s28  ;;  %s23_s25 = int_to_ptr.vmem [resolvable:$true] %s22_s25 }
   0x4   :  { %p1183_p1 = scmp.lt.u32.totalorder %s1179_s28, %s1472_s1 }
   0x6   :  { %p1185_p2 = pnand %p1183_p1, %p1180_p0 }
   0x8   :  { %1188 = shalt.err (!%p1185_p2)
}
   0x9   :  { %s1189_s10 = scalar_lea.vmem %s23_s25, 3072  ;;  %p1194_p4 = scmp.lt.s32.totalorder %s23_s25, %s23_s25 }
   0xa   :  { %p1190_p3 = scmp.ne.s32.totalorder %s23_s25, %s1189_s10  ;;  %p1195_p5 = scmp.lt.s32.totalorder %s1189_s10, %s1189_s10 }
   0xc   :  { %p1196_p6 = por %p1195_p5, %p1194_p4 }
   0xe   :  { %p1197_p7 = pnand %p1196_p6, %p1190_p3 }
  0x10   :  { %1200 = shalt.err (!%p1197_p7)
}
  0x11   :  { %s1252_s11 = smov 64   ;;  %s1253_s12 = smov 4  }
  0x12   :  { %28 = dma.hbm_to_vmem [thread:$0]  %s1472_s1, 3072, %s23_s25, [#allocation3], %s1252_s11, %s1252_s11, %s1253_s12  }
  0x13   :  { %s1254_s15 = smov [#allocation5]   ;;  %s1201_s19 = scalar_lea.hbm %s1475_s4, 3072 }
  0x14   :  { %s38_s16 = sshll.u32 %s1254_s15, 4  ;;  %p1202_p8 = scmp.ne.s32.totalorder %s1475_s4, %s1201_s19  ;;  %s39_s16 = int_to_ptr.vmem [resolvable:$true] %s38_s16 }
  0x15   :  { %p1205_p9 = scmp.lt.u32.totalorder %s1201_s19, %s1475_s4 }
  0x17   :  { %p1207_p10 = pnand %p1205_p9, %p1202_p8 }
  0x19   :  { %1210 = shalt.err (!%p1207_p10)
}
  0x1a   :  { %s1211_s24 = scalar_lea.vmem %s39_s16, 3072  ;;  %p1216_p12 = scmp.lt.s32.totalorder %s39_s16, %s39_s16 }
  0x1b   :  { %p1212_p11 = scmp.ne.s32.totalorder %s39_s16, %s1211_s24  ;;  %p1217_p13 = scmp.lt.s32.totalorder %s1211_s24, %s1211_s24 }
  0x1d   :  { %p1218_p0 = por %p1217_p13, %p1216_p12 }
  0x1f   :  { %p1219_p1 = pnand %p1218_p0, %p1212_p11 }
  0x21   :  { %1222 = shalt.err (!%p1219_p1)
}
  0x22   :  { %44 = dma.hbm_to_vmem [thread:$0]  %s1475_s4, 3072, %s39_s16, [#allocation6], %s1252_s11, %s1252_s11, %s1253_s12  }
  0x23   :  { %1245 = dma.done.wait [#allocation3], 3072  }
  0x24   :  { %1246 = vsyncadd [#allocation3], 4294964224 }
  0x25   :  { %1247 = dma.done.wait [#allocation6], 3072  }
  0x26   :  { %1248 = vsyncadd [#allocation6], 4294964224  ;;  %v1127_v0 = vld [vmem:[#allocation2 + $0x40] sm:$0xff]   ;;  %v1130_v3 = vld [vmem:[#allocation2 + $0x48] sm:$0xff]   ;;  %vm68_vm0 = vcmask 1046528   ;;  %vm83_vm1 = vcmask 1045504  }
  0x27   :  { %v1128_v1 = vld [vmem:[#allocation2] sm:$0xff]   ;;  %1001 = vmatprep.subr.bf16.mxu0 %v1127_v0  ;;  %v1131_v4 = vld [vmem:[#allocation2 + $0x8] sm:$0xff]   ;;  %v1133_v6 = vld [vmem:[#allocation2 + $0x50] sm:$0xff]   ;;  %vm416_vm2 = vcmask 1040384   ;;  %s1256_s15 = smov 16   ;;  %s1257_s16 = smov 32  }
  0x28   :  { %v1129_v2 = vld [vmem:[#allocation2 + $0x80] sm:$0xff]   ;;  %1002 = vmatpush3.bf16.msra.mxu0 %v1128_v1  ;;  %v1132_v5 = vld [vmem:[#allocation2 + $0x88] sm:$0xff]   ;;  %v1134_v7 = vld [vmem:[#allocation2 + $0x10] sm:$0xff]   ;;  %vm1258_vm4 = vmmov 1   ;;  %s1259_s22 = smov [#allocation7]  }
  0x29   :  { %1077 = vmatprep.subr.bf16.mxu1 %v1129_v2  ;;  %1003 = vmatprep.subr.bf16.mxu0 %v1130_v3  ;;  %v1135_v8 = vld [vmem:[#allocation2 + $0x90] sm:$0xff]   ;;  %v1136_v9 = vld [vmem:[#allocation2 + $0x58] sm:$0xff]   ;;  %v1139_v12 = vld [vmem:[#allocation2 + $0x60] sm:$0xff]   ;;  %s928_s23 = sshll.u32 %s1259_s22, 4  ;;  %s929_s23 = int_to_ptr.vmem [resolvable:$true] %s928_s23 }
  0x2a   :  { %1078 = vmatpush3.bf16.msra.mxu1 %v1129_v2  ;;  %v1137_v10 = vld [vmem:[#allocation2 + $0x18] sm:$0xff]   ;;  %v1141_v13 = vld [vmem:[#allocation2 + $0xa0] sm:$0xff]   ;;  %v1142_v15 = vld [vmem:[#allocation2 + $0x68] sm:$0xff]   ;;  %p1228_p3 = scmp.lt.s32.totalorder %s929_s23, %s929_s23 }
  0x2b   :  { %1079 = vmatprep.subr.bf16.mxu1 %v1132_v5  ;;  %v1138_v11 = vld [vmem:[#allocation2 + $0x98] sm:$0xff]   ;;  %v1140_v14 = vld [vmem:[#allocation2 + $0x20] sm:$0xff]   ;;  %v1144_v16 = vld [vmem:[#allocation2 + $0xa8] sm:$0xff]  }
  0x2c   :  { %1004 = vmatpush3.bf16.msra.mxu0 %v1131_v4  ;;  %v1143_v17 = vld [vmem:[#allocation2 + $0x28] sm:$0xff]   ;;  %v1145_v18 = vld [vmem:[#allocation2 + $0x70] sm:$0xff]   ;;  %v1148_v21 = vld [vmem:[#allocation2 + $0x78] sm:$0xff]  }
  0x2d   :  { %1005 = vmatprep.subr.bf16.mxu0 %v1133_v6  ;;  %v1146_v19 = vld [vmem:[#allocation2 + $0x30] sm:$0xff]   ;;  %v56_v22 = vld [vmem:[%s1471_s0] sm:$0xff]  ;;  %v57_v23 = vld [vmem:[%s1471_s0 + $0x8] sm:$0xff] }
  0x2e   :  { %1080 = vmatpush3.bf16.msra.mxu1 %v1132_v5  ;;  %v1147_v20 = vld [vmem:[#allocation2 + $0xb0] sm:$0xff]   ;;  %v1149_v25 = vld [vmem:[#allocation2 + $0x38] sm:$0xff]   ;;  %v69_v27 = vrot.slane %v56_v22, 1  ;;  %v70_v28 = vrot.slane %v57_v23, 1  ;;  %v60_v31 = vld [vmem:[%s1471_s0 + $0x20] sm:$0xff]  ;;  %v84_v32 = vrot.slane %v56_v22, 2  ;;  %v98_v49 = vpack.c.bf16 %v57_v23, %v56_v22 }
  0x2f   :  { %1081 = vmatprep.subr.bf16.mxu1 %v1135_v8  ;;  %v58_v24 = vld [vmem:[%s1471_s0 + $0x10] sm:$0x3]  ;;  %v1150_v26 = vld [vmem:[#allocation2 + $0xb8] sm:$0xff]   ;;  %v85_v33 = vrot.slane %v57_v23, 2  ;;  %v61_v35 = vld [vmem:[%s1471_s0 + $0x28] sm:$0x3] }
  0x30   :  { %1006 = vmatpush3.bf16.msra.mxu0 %v1134_v7  ;;  %v72_v29 = vrot.slane %v58_v24, 1  ;;  %v59_v30 = vld [vmem:[%s1471_s0 + $0x18] sm:$0xff]  ;;  %v87_v34 = vrot.slane %v58_v24, 2  ;;  %v1348_v37 = vsel %vm68_vm0, %v69_v27, %v70_v28  ;;  %v90_v39 = vrot.slane %v60_v31, 2  ;;  %s1255_s0 = smov 8   ;;  %vm991_vm3 = vmneg %vm416_vm2 }
  0x31   :  { %1007 = vmatprep.subr.bf16.mxu0 %v1136_v9  ;;  %v89_v36 = vrot.slane %v59_v30, 2  ;;  %v92_v40 = vrot.slane %v61_v35, 2  ;;  %v86_v42 = vsel %vm83_vm1, %v84_v32, %v85_v33  ;;  %v74_v44 = vrot.slane %v59_v30, 1  ;;  %vm1421_vm5 = vmpackc.low %vm1258_vm4, %vm991_vm3 }
  0x32   :  { %1082 = vmatpush3.bf16.msra.mxu1 %v1135_v8  ;;  %v1351_v38 = vsel %vm68_vm0, %v70_v28, %v72_v29  ;;  %v88_v43 = vsel %vm83_vm1, %v85_v33, %v87_v34  ;;  %v75_v48 = vrot.slane %v60_v31, 1  ;;  %v77_v50 = vrot.slane %v61_v35, 1 }
  0x33   :  { %1083 = vmatprep.subr.bf16.mxu1 %v1138_v11  ;;  %v99_v41 = vpack.c.bf16 %v1351_v38, %v1348_v37  ;;  %v100_v45 = vpack.c.bf16 %v88_v43, %v86_v42  ;;  %v91_v46 = vsel %vm83_vm1, %v89_v36, %v90_v39  ;;  %v93_v47 = vsel %vm83_vm1, %v90_v39, %v92_v40  ;;  %v1151_v43 = vld [vmem:[#allocation5 + $0x40] sm:$0xff]  }
  0x34   :  { %1008 = vmatpush3.bf16.msra.mxu0 %v1137_v10  ;;  %v1360_v51 = vsel %vm68_vm0, %v74_v44, %v75_v48  ;;  %v103_v52 = vpack.c.bf16 %v93_v47, %v91_v46  ;;  %v1363_v53 = vsel %vm68_vm0, %v75_v48, %v77_v50  ;;  %v101_v55 = vpack.c.bf16 %v60_v31, %v59_v30  ;;  %v1152_v44 = vld [vmem:[#allocation5 + $0x80] sm:$0xff]   ;;  %v1154_v46 = vld [vmem:[#allocation5 + $0x48] sm:$0xff]   ;;  %v1158_v50 = vld [vmem:[#allocation5 + $0x90] sm:$0xff]  }
  0x35   :  { %1009 = vmatprep.subr.bf16.mxu0 %v1139_v12  ;;  %328 = vmatprep.mubr.bf16.mxu0 %v99_v41  ;;  %v102_v54 = vpack.c.bf16 %v1363_v53, %v1360_v51  ;;  %v1155_v47 = vld [vmem:[#allocation5 + $0x88] sm:$0xff]  }
  0x36   :  { %1084 = vmatpush3.bf16.msra.mxu1 %v1138_v11  ;;  %1093 = vmatprep.mubr.bf16.mxu1 %v100_v45  ;;  %v1153_v45 = vld [vmem:[#allocation5] sm:$0xff]   ;;  %v1156_v48 = vld [vmem:[#allocation5 + $0x8] sm:$0xff]  }
  0x37   :  { %1085 = vmatprep.subr.bf16.mxu1 %v1141_v13 }
  0x38   :  { %1010 = vmatpush3.bf16.msra.mxu0 %v1140_v14 }
  0x39   :  { %1011 = vmatprep.subr.bf16.mxu0 %v1142_v15 }
  0x3a   :  { %1086 = vmatpush3.bf16.msra.mxu1 %v1141_v13 }
  0x3b   :  { %1087 = vmatprep.subr.bf16.mxu1 %v1144_v16 }
  0x3c   :  { %1012 = vmatpush3.bf16.msra.mxu0 %v1143_v17 }
  0x3d   :  { %1013 = vmatprep.subr.bf16.mxu0 %v1145_v18 }
  0x3e   :  { %1088 = vmatpush3.bf16.msra.mxu1 %v1144_v16 }
  0x3f   :  { %1089 = vmatprep.subr.bf16.mxu1 %v1147_v20 }
  0x40   :  { %1014 = vmatpush3.bf16.msra.mxu0 %v1146_v19 }
  0x41   :  { %1015 = vmatprep.subr.bf16.mxu0 %v1148_v21 }
  0x42   :  { %1090 = vmatpush3.bf16.msra.mxu1 %v1147_v20 }
  0x43   :  { %1091 = vmatprep.subr.bf16.mxu1 %v1150_v26 }
  0x44   :  { %1016 = vmatpush3.bf16.msra.mxu0 %v1149_v25 }
  0x45   :  { %1039 = vmatprep.subr.bf16.mxu0 %v1151_v43 }
  0x46   :  { %1092 = vmatpush3.bf16.msra.mxu1 %v1150_v26 }
  0x47   :  { %329 = vmatmul.mubr.bf16.vlgmr.msra.gmra.mrb[0].mxu0 %v98_v49  ;;  %1097 = vmatprep.subr.bf16.mxu1 %v1152_v44  ;;  %v1157_v49 = vld [vmem:[#allocation5 + $0x50] sm:$0xff]  }
  0x48   :  { %336 = vmatprep.mubr.bf16.mxu0 %v102_v54  ;;  %1040 = vmatpush3.bf16.msra.mxu0 %v1153_v45  ;;  %v1160_v54 = vld [vmem:[#allocation5 + $0x58] sm:$0xff]  }
  0x49   :  { %1094 = vmatmul.mubr.bf16.vlgmr.msra.gmra.mrb[0].mxu1 %v103_v52  ;;  %1041 = vmatprep.subr.bf16.mxu0 %v1154_v46  ;;  %v1159_v52 = vld [vmem:[#allocation5 + $0x10] sm:$0xff]  }
  0x4a   :  { %1098 = vmatpush3.bf16.msra.mxu1 %v1152_v44 }
  0x4b   :  { %1099 = vmatprep.subr.bf16.mxu1 %v1155_v47 }
  0x4c   :  { %1042 = vmatpush3.bf16.msra.mxu0 %v1156_v48 }
  0x4d   :  { %1043 = vmatprep.subr.bf16.mxu0 %v1157_v49 }
  0x4e   :  { %1100 = vmatpush3.bf16.msra.mxu1 %v1155_v47 }
  0x4f   :  { %337 = vmatmul.mubr.bf16.gmra.mrb[4].mxu0 %v101_v55  ;;  %1101 = vmatprep.subr.bf16.mxu1 %v1158_v50  ;;  %v1161_v55 = vld [vmem:[#allocation5 + $0x98] sm:$0xff]  }
  0x50   :  { %1044 = vmatpush3.bf16.msra.mxu0 %v1159_v52 }
  0x51   :  { %1045 = vmatprep.subr.bf16.mxu0 %v1160_v54 }
  0x52   :  { %1102 = vmatpush3.bf16.msra.mxu1 %v1158_v50 }
  0x53   :  { %1103 = vmatprep.subr.bf16.mxu1 %v1161_v55 }
  0x56   :  { %1104 = vmatpush3.bf16.msra.mxu1 %v1161_v55 }
 0x11a   :  { %v1017_v56 = vpop.f32.mrb[0].mxu0 }
 0x11b   :  { %v1018_v57 = vpop.f32.mrb[1].mxu0 }
 0x11c   :  { %v1019_v58 = vadd.f32 %v1018_v57, %v1017_v56  ;;  %v1020_v59 = vpop.f32.mrb[2].mxu0  ;;  %v1095_v60 = vpop.f32.mrb[0].mxu1  ;;  %v1162_v56 = vld [vmem:[#allocation5 + $0x18] sm:$0xff]   ;;  %v1163_v57 = vld [vmem:[#allocation5 + $0x60] sm:$0xff]  }
 0x11d   :  { %v1021_v61 = vpop.f32.mrb[3].mxu0  ;;  %v379_v62 = vpop.f32.mrb[1].mxu1  ;;  %1046 = vmatpush3.bf16.msra.mxu0 %v1162_v56 }
 0x11e   :  { %v1022_v63 = vadd.f32 %v1021_v61, %v1020_v59  ;;  %v1367_v0 = vadd.f32 %v1019_v58, %v379_v62  ;;  %v1096_v1 = vpop.f32.mrb[2].mxu1  ;;  %v1164_v58 = vld [vmem:[#allocation5 + $0xa0] sm:$0xff]   ;;  %1047 = vmatprep.subr.bf16.mxu0 %v1163_v57  ;;  %v1167_v61 = vld [vmem:[#allocation5 + $0xa8] sm:$0xff]  }
 0x11f   :  { %v382_v2 = vpop.f32.mrb[3].mxu1  ;;  %v1165_v59 = vld [vmem:[#allocation5 + $0x20] sm:$0xff]   ;;  %1105 = vmatprep.subr.bf16.mxu1 %v1164_v58  ;;  %v1168_v62 = vld [vmem:[#allocation5 + $0x28] sm:$0xff]  }
 0x120   :  { %v1369_v3 = vadd.f32 %v1022_v63, %v382_v2  ;;  %v403_v10 = vmul.f32 %v1367_v0, %v1367_v0  ;;  %1106 = vmatpush3.bf16.msra.mxu1 %v1164_v58  ;;  %v1169_v63 = vld [vmem:[#allocation5 + $0x70] sm:$0xff]  }
 0x121   :  { %1048 = vmatpush3.bf16.msra.mxu0 %v1165_v59  ;;  %1107 = vmatprep.subr.bf16.mxu1 %v1167_v61  ;;  %v1171_v2 = vld [vmem:[#allocation5 + $0x30] sm:$0xff]  }
 0x122   :  { %v1023_v4 = vpop.f32.mrb[4].mxu0  ;;  %v404_v6 = vmul.f32 %v1369_v3, %v1369_v3  ;;  %v394_v11 = vadd.f32 %v1369_v3, %v1367_v0 }
 0x123   :  { %v1024_v5 = vpop.f32.mrb[5].mxu0 }
 0x124   :  { %v1025_v7 = vadd.f32 %v1024_v5, %v1023_v4  ;;  %v1026_v8 = vpop.f32.mrb[6].mxu0  ;;  %v407_v14 = vadd.f32 %v404_v6, %v403_v10  ;;  %1108 = vmatpush3.bf16.msra.mxu1 %v1167_v61  ;;  %v1172_v4 = vld [vmem:[#allocation5 + $0x78] sm:$0xff]  }
 0x125   :  { %v1027_v9 = vpop.f32.mrb[7].mxu0  ;;  %v1173_v5 = vld [vmem:[#allocation5 + $0xb8] sm:$0xff]  }
 0x126   :  { %v1377_v12 = vadd.f32 %v1095_v60, %v1025_v7  ;;  %v1028_v13 = vadd.f32 %v1027_v9, %v1026_v8  ;;  %v1166_v60 = vld [vmem:[#allocation5 + $0x68] sm:$0xff]   ;;  %v1174_v6 = vld [vmem:[#allocation5 + $0x38] sm:$0xff]  }
 0x127   :  { %1049 = vmatprep.subr.bf16.mxu0 %v1166_v60 }
 0x128   :  { %v395_v15 = vadd.f32 %v394_v11, %v1377_v12  ;;  %v405_v16 = vmul.f32 %v1377_v12, %v1377_v12  ;;  %v1382_v17 = vadd.f32 %v1096_v1, %v1028_v13  ;;  %v1170_v1 = vld [vmem:[#allocation5 + $0xb0] sm:$0xff]   ;;  %1050 = vmatpush3.bf16.msra.mxu0 %v1168_v62  ;;  %v437_v13 = vlaneseq }
 0x129   :  { %1051 = vmatprep.subr.bf16.mxu0 %v1169_v63  ;;  %1109 = vmatprep.subr.bf16.mxu1 %v1170_v1 }
 0x12a   :  { %v408_v18 = vadd.f32 %v407_v14, %v405_v16  ;;  %v396_v19 = vadd.f32 %v395_v15, %v1382_v17  ;;  %v406_v20 = vmul.f32 %v1382_v17, %v1382_v17  ;;  %1110 = vmatpush3.bf16.msra.mxu1 %v1170_v1  ;;  %v1392_v16 = vshrl.u32 %v437_v13, 7 }
 0x12b   :  { %1111 = vmatprep.subr.bf16.mxu1 %v1173_v5 }
 0x12c   :  { %v397_v21 = vrot.slane %v396_v19, 4  ;;  %v409_v22 = vadd.f32 %v408_v18, %v406_v20  ;;  %1052 = vmatpush3.bf16.msra.mxu0 %v1171_v2 }
 0x12d   :  { %1053 = vmatprep.subr.bf16.mxu0 %v1172_v4 }
 0x12e   :  { %v398_v23 = vadd.f32 %v397_v21, %v396_v19  ;;  %v410_v24 = vrot.slane %v409_v22, 4  ;;  %1112 = vmatpush3.bf16.msra.mxu1 %v1173_v5  ;;  %v439_v19 = vsub.s32 0, %v1392_v16  ;;  %v449_v21 = vsub.s32 1, %v1392_v16 }
 0x130   :  { %v399_v25 = vrot.slane %v398_v23, 2  ;;  %v411_v26 = vadd.f32 %v410_v24, %v409_v22  ;;  %1054 = vmatpush3.bf16.msra.mxu0 %v1174_v6 }
 0x132   :  { %v400_v27 = vadd.f32 %v399_v25, %v398_v23  ;;  %v412_v28 = vrot.slane %v411_v26, 2 }
 0x134   :  { %v401_v29 = vrot.slane %v400_v27, 1  ;;  %v413_v30 = vadd.f32 %v412_v28, %v411_v26  ;;  %v965_v28 = vld [vmem:[%s1473_s2] ss:$0 sm:$0xff] }
 0x136   :  { %v414_v31 = vrot.slane %v413_v30, 1  ;;  %v402_v32 = vadd.f32 %v401_v29, %v400_v27 }
 0x138   :  { %v415_v33 = vadd.f32 %v414_v31, %v413_v30 }
 0x13a   :  { %v417_v34 = vsel %vm416_vm2, %v402_v32, %v415_v33 }
 0x13b   :  { %418 = vrot.lane.b32.xlu0 %v417_v34, %s1255_s0 }
 0x1ad   :  { %v419_v35 = vpop.permute.xlu0 %418 }
 0x1ae   :  { %v420_v36 = vadd.f32 %v419_v35, %v417_v34 }
 0x1b0   :  { %421 = vrot.lane.b32.xlu0 %v420_v36, %s1256_s15 }
 0x222   :  { %v422_v39 = vpop.permute.xlu0 %421 }
 0x223   :  { %v423_v40 = vadd.f32 %v422_v39, %v420_v36 }
 0x225   :  { %424 = vrot.lane.b32.xlu1 %v423_v40, %s1257_s16 }
 0x297   :  { %v425_v41 = vpop.permute.xlu1 %424 }
 0x298   :  { %v426_v42 = vadd.f32 %v425_v41, %v423_v40 }
 0x29a   :  { %427 = vrot.lane.b32.xlu1 %v426_v42, %s1252_s11 }
 0x30c   :  { %v428_v7 = vpop.permute.xlu1 %427 }
 0x30d   :  { %v429_v8 = vadd.f32 %v428_v7, %v426_v42 }
 0x30f   :  { %v430_v9 = vmul.f32 0.001953125, %v429_v8 }
 0x311   :  { %v431_v10 = vmul.f32 %v430_v9, %v430_v9  ;;  %v440_v20 = vrot.slane %v430_v9, %v439_v19 }
 0x313   :  { %v433_v11 = vrot.slane %v431_v10, 7  ;;  %v441_v23 = vsub.f32 %v1367_v0, %v440_v20  ;;  %v442_v24 = vsub.f32 %v1369_v3, %v440_v20  ;;  %v443_v25 = vsub.f32 %v1377_v12, %v440_v20  ;;  %v966_v0 = vld [vmem:[%s1474_s3] ss:$0 sm:$0xff] }
 0x314   :  { %v444_v26 = vsub.f32 %v1382_v17, %v440_v20 }
 0x315   :  { %v435_v14 = vsub.f32 %v430_v9, %v433_v11 }
 0x317   :  { %v436_v15 = vmax.f32 %v435_v14, 0.0 }
 0x319   :  { %v445_v18 = vadd.f32 1e-05, %v436_v15 }
 0x31b   :  { %1175 = vrsqrt.f32 %v445_v18 }
 0x325   :  { %v1176_v22 = vpop.eup %1175 }
 0x326   :  { %v450_v27 = vrot.slane %v1176_v22, %v449_v21 }
 0x328   :  { %v451_v29 = vmul.f32 %v450_v27, %v441_v23  ;;  %v452_v30 = vmul.f32 %v450_v27, %v442_v24  ;;  %v453_v31 = vmul.f32 %v450_v27, %v443_v25  ;;  %v454_v32 = vmul.f32 %v450_v27, %v444_v26 }
 0x32a   :  { %v462_v3 = vmul.f32 %v965_v28, %v451_v29  ;;  %v464_v33 = vmul.f32 %v965_v28, %v453_v31  ;;  %v465_v12 = vmul.f32 %v965_v28, %v454_v32  ;;  %v463_v34 = vmul.f32 %v965_v28, %v452_v30 }
 0x32c   :  { %v473_v17 = vadd.f32 %v966_v0, %v462_v3  ;;  %v474_v35 = vadd.f32 %v966_v0, %v463_v34  ;;  %v475_v36 = vadd.f32 %v966_v0, %v464_v33  ;;  %v476_v39 = vadd.f32 %v966_v0, %v465_v12 }
 0x32e   :  { %v477_v40 = vmax.f32 %v473_v17, 0.0  ;;  %v478_v41 = vmax.f32 %v474_v35, 0.0  ;;  %v479_v42 = vmax.f32 %v475_v36, 0.0  ;;  %v480_v43 = vmax.f32 %v476_v39, 0.0 }
 0x330   :  { %v485_v44 = vrot.slane %v477_v40, 7  ;;  %v486_v45 = vrot.slane %v478_v41, 7  ;;  %v488_v46 = vrot.slane %v479_v42, 7  ;;  %v489_v47 = vrot.slane %v480_v43, 7 }
 0x332   :  { %v487_v48 = vsel %vm416_vm2, %v485_v44, %v486_v45  ;;  %v497_v49 = vsel %vm416_vm2, 0.0, %v485_v44  ;;  %v499_v50 = vsel %vm416_vm2, %v486_v45, 0.0  ;;  %v490_v52 = vsel %vm416_vm2, %v488_v46, %v489_v47 }
 0x333   :  { %v505_v54 = vrot.slane %v497_v49, 1  ;;  %v506_v55 = vrot.slane %v487_v48, 1  ;;  %v508_v56 = vrot.slane %v499_v50, 1  ;;  %v993_v57 = vpack.c.bf16 %v487_v48, %v485_v44 }
 0x334   :  { %v519_v58 = vrot.slane %v497_v49, 2  ;;  %v520_v59 = vrot.slane %v487_v48, 2  ;;  %v522_v60 = vrot.slane %v499_v50, 2  ;;  %v498_v61 = vsel %vm416_vm2, 0.0, %v488_v46 }
 0x335   :  { %v507_v62 = vsel %vm68_vm0, %v505_v54, %v506_v55  ;;  %v509_v63 = vsel %vm68_vm0, %v506_v55, %v508_v56  ;;  %v500_v1 = vsel %vm416_vm2, %v489_v47, 0.0  ;;  %v524_v2 = vrot.slane %v498_v61, 2 }
 0x336   :  { %v534_v4 = vpack.c.bf16 %v509_v63, %v507_v62  ;;  %v521_v5 = vsel %vm83_vm1, %v519_v58, %v520_v59  ;;  %v523_v6 = vsel %vm83_vm1, %v520_v59, %v522_v60  ;;  %v525_v8 = vrot.slane %v490_v52, 2 }
 0x337   :  { %v535_v9 = vpack.c.bf16 %v523_v6, %v521_v5  ;;  %v527_v10 = vrot.slane %v500_v1, 2  ;;  %v510_v11 = vrot.slane %v498_v61, 1  ;;  %v511_v13 = vrot.slane %v490_v52, 1 }
 0x338   :  { %763 = vmatprep.mubr.bf16.mxu0 %v534_v4  ;;  %v526_v14 = vsel %vm83_vm1, %v524_v2, %v525_v8  ;;  %v513_v15 = vrot.slane %v500_v1, 1  ;;  %v997_v25 = vpack.c.bf16 %v490_v52, %v488_v46 }
 0x339   :  { %1113 = vmatprep.mubr.bf16.mxu1 %v535_v9  ;;  %994 = vmatmul.mubr.msk.bf16.vlgmr.msra.gmra.mrb[8].mxu0 %vm1421_vm5, %v993_v57  ;;  %v528_v18 = vsel %vm83_vm1, %v525_v8, %v527_v10  ;;  %v512_v20 = vsel %vm68_vm0, %v510_v11, %v511_v13 }
 0x33a   :  { %v538_v22 = vpack.c.bf16 %v528_v18, %v526_v14  ;;  %v514_v23 = vsel %vm68_vm0, %v511_v13, %v513_v15 }
 0x33b   :  { %v537_v24 = vpack.c.bf16 %v514_v23, %v512_v20 }
 0x33c   :  { %1114 = vmatmul.mubr.bf16.vlgmr.msra.gmra.mrb[4].mxu1 %v538_v22 }
 0x33d   :  { %771 = vmatprep.mubr.bf16.mxu0 %v537_v24 }
 0x341   :  { %998 = vmatmul.mubr.msk.bf16.gmra.mrb[12].mxu0 %vm1421_vm5, %v997_v25 }
 0x40c   :  { %v1055_v26 = vpop.f32.mrb[8].mxu0 }
 0x40d   :  { %v1056_v27 = vpop.f32.mrb[9].mxu0 }
 0x40e   :  { %v1057_v28 = vadd.f32 %v1056_v27, %v1055_v26  ;;  %v1058_v29 = vpop.f32.mrb[10].mxu0 }
 0x40f   :  { %v1115_v30 = vpop.f32.mrb[4].mxu1  ;;  %v1059_v31 = vpop.f32.mrb[11].mxu0 }
 0x410   :  { %v814_v32 = vpop.f32.mrb[5].mxu1  ;;  %v1060_v0 = vadd.f32 %v1059_v31, %v1058_v29 }
 0x411   :  { %v1433_v3 = vadd.f32 %v1057_v28, %v814_v32  ;;  %v1116_v33 = vpop.f32.mrb[6].mxu1 }
 0x412   :  { %v817_v12 = vpop.f32.mrb[7].mxu1 }
 0x413   :  { %v818_v34 = vadd.f32 %v1060_v0, %v817_v12  ;;  %v838_v42 = vmul.f32 %v1433_v3, %v1433_v3  ;;  %v999_v0 = vld [vmem:[%s1476_s5] ss:$0 sm:$0xff]  ;;  %s1223_s5 = scalar_lea.vmem %s929_s23, 512 }
 0x414   :  { %v1061_v17 = vpop.f32.mrb[12].mxu0  ;;  %p1224_p2 = scmp.ne.s32.totalorder %s929_s23, %s1223_s5  ;;  %p1229_p4 = scmp.lt.s32.totalorder %s1223_s5, %s1223_s5 }
 0x415   :  { %v1062_v35 = vpop.f32.mrb[13].mxu0  ;;  %v839_v36 = vmul.f32 %v818_v34, %v818_v34  ;;  %v829_v43 = vadd.f32 %v818_v34, %v1433_v3 }
 0x416   :  { %v1063_v39 = vadd.f32 %v1062_v35, %v1061_v17  ;;  %v1064_v40 = vpop.f32.mrb[14].mxu0  ;;  %p1230_p5 = por %p1229_p4, %p1228_p3 }
 0x417   :  { %v1065_v41 = vpop.f32.mrb[15].mxu0  ;;  %v842_v46 = vadd.f32 %v839_v36, %v838_v42 }
 0x418   :  { %v823_v44 = vadd.f32 %v1115_v30, %v1063_v39  ;;  %v1066_v45 = vadd.f32 %v1065_v41, %v1064_v40  ;;  %p1231_p6 = pnand %p1230_p5, %p1224_p2 }
 0x41a   :  { %v830_v47 = vadd.f32 %v829_v43, %v823_v44  ;;  %v840_v48 = vmul.f32 %v823_v44, %v823_v44  ;;  %v826_v49 = vadd.f32 %v1116_v33, %v1066_v45 }
 0x41c   :  { %v843_v50 = vadd.f32 %v842_v46, %v840_v48  ;;  %v831_v52 = vadd.f32 %v830_v47, %v826_v49  ;;  %v841_v54 = vmul.f32 %v826_v49, %v826_v49 }
 0x41e   :  { %v832_v55 = vrot.slane %v831_v52, 4  ;;  %v844_v56 = vadd.f32 %v843_v50, %v841_v54 }
 0x420   :  { %v833_v57 = vadd.f32 %v832_v55, %v831_v52  ;;  %v845_v58 = vrot.slane %v844_v56, 4 }
 0x422   :  { %v834_v59 = vrot.slane %v833_v57, 2  ;;  %v846_v60 = vadd.f32 %v845_v58, %v844_v56 }
 0x424   :  { %v835_v61 = vadd.f32 %v834_v59, %v833_v57  ;;  %v847_v62 = vrot.slane %v846_v60, 2 }
 0x426   :  { %v836_v63 = vrot.slane %v835_v61, 1  ;;  %v848_v1 = vadd.f32 %v847_v62, %v846_v60 }
 0x428   :  { %v849_v2 = vrot.slane %v848_v1, 1  ;;  %v837_v4 = vadd.f32 %v836_v63, %v835_v61 }
 0x42a   :  { %v850_v5 = vadd.f32 %v849_v2, %v848_v1 }
 0x42c   :  { %v851_v6 = vsel %vm416_vm2, %v837_v4, %v850_v5 }
 0x42d   :  { %852 = vrot.lane.b32.xlu0 %v851_v6, %s1255_s0 }
 0x49f   :  { %v853_v7 = vpop.permute.xlu0 %852 }
 0x4a0   :  { %v854_v8 = vadd.f32 %v853_v7, %v851_v6 }
 0x4a2   :  { %855 = vrot.lane.b32.xlu1 %v854_v8, %s1256_s15 }
 0x514   :  { %v856_v9 = vpop.permute.xlu1 %855 }
 0x515   :  { %v857_v10 = vadd.f32 %v856_v9, %v854_v8 }
 0x517   :  { %858 = vrot.lane.b32.xlu0 %v857_v10, %s1257_s16 }
 0x589   :  { %v859_v11 = vpop.permute.xlu0 %858 }
 0x58a   :  { %v860_v13 = vadd.f32 %v859_v11, %v857_v10 }
 0x58c   :  { %861 = vrot.lane.b32.xlu1 %v860_v13, %s1252_s11 }
 0x5fe   :  { %v862_v14 = vpop.permute.xlu1 %861 }
 0x5ff   :  { %v863_v15 = vadd.f32 %v862_v14, %v860_v13 }
 0x601   :  { %v864_v18 = vmul.f32 0.001953125, %v863_v15 }
 0x603   :  { %v865_v20 = vmul.f32 %v864_v18, %v864_v18  ;;  %v874_v26 = vrot.slane %v864_v18, %v439_v19  ;;  %v1000_v19 = vld [vmem:[%s1477_s6] ss:$0 sm:$0xff] }
 0x605   :  { %v867_v22 = vrot.slane %v865_v20, 7  ;;  %v875_v28 = vsub.f32 %v1433_v3, %v874_v26  ;;  %v876_v29 = vsub.f32 %v818_v34, %v874_v26  ;;  %v877_v30 = vsub.f32 %v823_v44, %v874_v26 }
 0x606   :  { %v878_v31 = vsub.f32 %v826_v49, %v874_v26 }
 0x607   :  { %v869_v23 = vsub.f32 %v864_v18, %v867_v22 }
 0x609   :  { %v870_v24 = vmax.f32 %v869_v23, 0.0 }
 0x60b   :  { %v879_v25 = vadd.f32 1e-05, %v870_v24 }
 0x60d   :  { %1177 = vrsqrt.f32 %v879_v25 }
 0x617   :  { %v1178_v27 = vpop.eup %1177 }
 0x618   :  { %v884_v32 = vrot.slane %v1178_v27, %v449_v21 }
 0x61a   :  { %v885_v33 = vmul.f32 %v884_v32, %v875_v28  ;;  %v886_v12 = vmul.f32 %v884_v32, %v876_v29  ;;  %v887_v17 = vmul.f32 %v884_v32, %v877_v30  ;;  %v888_v35 = vmul.f32 %v884_v32, %v878_v31 }
 0x61c   :  { %v896_v36 = vmul.f32 %v999_v0, %v885_v33  ;;  %v897_v3 = vmul.f32 %v999_v0, %v886_v12  ;;  %v898_v34 = vmul.f32 %v999_v0, %v887_v17  ;;  %v899_v39 = vmul.f32 %v999_v0, %v888_v35 }
 0x61e   :  { %v907_v40 = vadd.f32 %v1000_v19, %v896_v36  ;;  %v908_v41 = vadd.f32 %v1000_v19, %v897_v3  ;;  %v909_v16 = vadd.f32 %v1000_v19, %v898_v34  ;;  %v910_v21 = vadd.f32 %v1000_v19, %v899_v39 }
 0x620   :  { %v911_v42 = vadd.f32 %v907_v40, %v1348_v37  ;;  %v912_v43 = vadd.f32 %v908_v41, %v1351_v38  ;;  %v913_v44 = vadd.f32 %v909_v16, %v1360_v51  ;;  %v914_v45 = vadd.f32 %v910_v21, %v1363_v53 }
 0x622   :  { %v915_v46 = vmax.f32 %v911_v42, 0.0  ;;  %v916_v47 = vmax.f32 %v912_v43, 0.0  ;;  %v917_v48 = vmax.f32 %v913_v44, 0.0  ;;  %v918_v49 = vmax.f32 %v914_v45, 0.0 }
 0x624   :  { %919 = vst [vmem:[#allocation7] sm:$0xff] %v915_v46  ;;  %920 = vst [vmem:[#allocation7 + $0x8] sm:$0xff] %v916_v47 }
 0x625   :  { %921 = vst [vmem:[#allocation7 + $0x10] sm:$0xff] %v917_v48  ;;  %922 = vst [vmem:[#allocation7 + $0x18] sm:$0xff] %v918_v49 }
 0x626   :  { %1234 = shalt.err (!%p1231_p6)
}
 0x627   :  { %s1235_s1 = scalar_lea.hbm %s1478_s7, 512 }
 0x628   :  { %p1236_p7 = scmp.ne.s32.totalorder %s1478_s7, %s1235_s1  ;;  %p1239_p8 = scmp.lt.u32.totalorder %s1235_s1, %s1478_s7 }
 0x62a   :  { %p1241_p9 = pnand %p1239_p8, %p1236_p7 }
 0x62c   :  { %1244 = shalt.err (!%p1241_p9)
}
 0x62d   :  { %s1260_s28 = smov 128  }
 0x62e   :  { %934 = dma.vmem_to_hbm [thread:$0]  %s929_s23, 512, %s1478_s7, [#allocation4], %s1260_s28, %s1260_s28, %s1255_s0  }
 0x62f   :  { %1249 = dma.done.wait [#allocation4], 512  }
 0x630   :  { %1250 = vsyncadd [#allocation4], 4294966784 }
 0x631   :  { %938 = vsyncpa [#allocation3], 1 }
 0x632   :  { %939 = vsyncpa [#allocation6], 1 }
 0x633   :  { %940 = vsyncpa [#allocation4], 1 }

</bundles_post_ra>
